<compile_context>
chip_gen: v5e
topology: v5e:2x2
jax: 0.10.0
libtpu: 0.0.40
codegen_flags: <defaults>
</compile_context>

<pallas_src>
import functools

import jax
import jax.numpy as jnp
from jax.experimental import pallas as pl
from jax.experimental.pallas import tpu as pltpu


_NPAD = 128  # classifier output padded to one full lane-width for unmasked stores


# ---------------------------------------------------------------------------
# Single fused kernel: banded conv3x3 (+bias, ReLU) -> pooled head (fc1 has the
# global-average-pool folded in) -> fc2.  One grid step = TB batch elements.
# ---------------------------------------------------------------------------
def _fused_forward_kernel(xs_ref, wc_ref, bc_ref, w1_ref, b1_ref, w2_ref,
                          b2_ref, o_ref, *, H, TB):
    """Shapes (per grid step):

      xs_ref : (3, TB*H, (W+2)*C)   bf16  padded rows, pre-shifted by tap di
      wc_ref : (3, (W+2)*C, W*Cout) bf16  banded conv weight (3 dj taps folded)
      bc_ref : (1, W*Cout)          f32   conv bias tiled over W
      w1_ref : (W*Cout, hidden)     bf16  fc1 with the (H,W) mean-pool folded in
      b1_ref : (1, hidden)          f32
      w2_ref : (hidden, NPAD)       bf16  fc2, output lane-padded to 128
      b2_ref : (1, NPAD)            f32
      o_ref  : (TB, NPAD)           f32
    """
    M = TB * H
    WCo = wc_ref.shape[2]

    # Conv accumulator in the lane-dense (TB*H, W*Cout) layout, bias folded
    # into the init (single broadcast).  3 banded matmuls replace the 9 taps.
    acc = jnp.broadcast_to(bc_ref[...], (M, WCo)).astype(jnp.float32)
    for di in range(3):
        acc = acc + jnp.dot(xs_ref[di], wc_ref[di],
                            preferred_element_type=jnp.float32)
    conv = jnp.maximum(acc, 0.0)                       # ReLU before pool (required)

    # Per-sample sum over H; the 1/(H*W) mean factor lives inside w1_ref.
    rows = [jnp.sum(conv[b * H:(b + 1) * H, :], axis=0, keepdims=True)
            for b in range(TB)]
    pooled = rows[0] if TB == 1 else jnp.concatenate(rows, axis=0)  # (TB, WCo) f32

    # Classifier head, batched over TB (bf16 MXU operands, f32 accumulation).
    h = jnp.maximum(
        jnp.dot(pooled.astype(w1_ref.dtype), w1_ref[...],
                preferred_element_type=jnp.float32) + b1_ref[...], 0.0)
    logits = (jnp.dot(h.astype(w2_ref.dtype), w2_ref[...],
                      preferred_element_type=jnp.float32) + b2_ref[...])
    o_ref[...] = logits                                # lane-dense (TB, 128) store


# ---------------------------------------------------------------------------
# One-time weight packing (call ONCE when params are loaded, outside the jit).
# ---------------------------------------------------------------------------
def pack_params(params, *, H, W, compute_dtype=jnp.bfloat16):
    conv_w = jnp.asarray(params["conv_w"], jnp.float32)    # (Cout, Cin, 3, 3)
    conv_b = jnp.asarray(params["conv_b"], jnp.float32)    # (Cout,)
    fc1_w = jnp.asarray(params["fc1_w"], jnp.float32)      # (hidden, Cout)
    fc1_b = jnp.asarray(params["fc1_b"], jnp.float32)      # (hidden,)
    fc2_w = jnp.asarray(params["fc2_w"], jnp.float32)      # (n_cls, hidden)
    fc2_b = jnp.asarray(params["fc2_b"], jnp.float32)      # (n_cls,)
    Cout, C = conv_w.shape[0], conv_w.shape[1]
    hidden, n_classes = fc1_w.shape[0], fc2_w.shape[0]
    assert n_classes <= _NPAD

    # Banded conv weight: one ((W+2)*C, W*Cout) matrix per vertical tap di with
    # the 3 horizontal taps dj folded into the band:
    #   BW[di][(w+dj)*C + ci, w*Cout + co] = conv_w[co, ci, di, dj]
    w_taps = jnp.transpose(conv_w, (2, 3, 1, 0))            # (3, 3, C, Cout)
    bands = []
    for di in range(3):
        bd = jnp.zeros(((W + 2) * C, W * Cout), jnp.float32)
        for dj in range(3):
            shift = jnp.zeros((W + 2, W), jnp.float32).at[dj:dj + W, :].set(
                jnp.eye(W, dtype=jnp.float32))              # shift[w+dj, w] = 1
            bd = bd + jnp.kron(shift, w_taps[di, dj])
        bands.append(bd)
    wc = jnp.stack(bands, axis=0)                           # (3, (W+2)*C, W*Cout)

    bc = jnp.tile(conv_b.reshape(1, Cout), (1, W))          # (1, W*Cout)

    # Fold the global average pool (mean over H and W) into fc1 (exact: ReLU is
    # applied before pooling and pooling is linear).
    pool_mat = jnp.tile(jnp.eye(Cout, dtype=jnp.float32), (W, 1))  # (W*Cout, Cout)
    w1p = (pool_mat @ fc1_w.T) / float(H * W)               # (W*Cout, hidden)
    b1 = fc1_b.reshape(1, hidden)

    # fc2 with output lane-padded to 128 so the final store is unmasked.
    w2p = jnp.zeros((hidden, _NPAD), jnp.float32).at[:, :n_classes].set(fc2_w.T)
    b2p = jnp.zeros((1, _NPAD), jnp.float32).at[:, :n_classes].set(fc2_b)

    return {
        "wc": wc.astype(compute_dtype),
        "bc": bc,
        "w1": w1p.astype(compute_dtype),
        "b1": b1,
        "w2": w2p.astype(compute_dtype),
        "b2": b2p,
    }


# ---------------------------------------------------------------------------
# FullModel.forward equivalent (jit this; packed weights come from pack_params)
# ---------------------------------------------------------------------------
def full_model_forward(x_nchw, packed, *, n_classes):
    B, C, H, W = x_nchw.shape
    compute_dtype = packed["wc"].dtype
    PC = (W + 2) * C

    # Batch blocking: TB samples per grid step, stacked along the sublane axis.
    TB = B if B <= 8 else 8
    B_pad = ((B + TB - 1) // TB) * TB

    # ---- activation-path layout glue (cheap, small) ----
    # NCHW -> NHWC, zero-pad spatially, flatten (W+2, C) into the lane axis,
    # pre-shift rows by the 3 vertical tap offsets, stack batch*H on sublanes.
    x = jnp.transpose(x_nchw, (0, 2, 3, 1)).astype(jnp.float32)
    xp = jnp.pad(x, ((0, B_pad - B), (1, 1), (1, 1), (0, 0)))
    xp = xp.reshape(B_pad, H + 2, PC).astype(compute_dtype)
    xs = jnp.stack([xp[:, di:di + H, :] for di in range(3)], axis=0)
    xs = xs.reshape(3, B_pad * H, PC)                       # (3, B_pad*H, (W+2)*C)

    kernel = functools.partial(_fused_forward_kernel, H=H, TB=TB)

    def whole(a):
        nd = a.ndim
        return pl.BlockSpec(a.shape, lambda b, _n=nd: (0,) * _n)

    out = pl.pallas_call(
        kernel,
        out_shape=jax.ShapeDtypeStruct((B_pad, _NPAD), jnp.float32),
        grid=(B_pad // TB,),
        in_specs=[
            pl.BlockSpec((3, TB * H, PC), lambda b: (0, b, 0)),
            whole(packed["wc"]), whole(packed["bc"]),
            whole(packed["w1"]), whole(packed["b1"]),
            whole(packed["w2"]), whole(packed["b2"]),
        ],
        out_specs=pl.BlockSpec((TB, _NPAD), lambda b: (b, 0)),
        compiler_params=pltpu.CompilerParams(
            dimension_semantics=("parallel",),
        ),
    )(xs, packed["wc"], packed["bc"], packed["w1"], packed["b1"],
      packed["w2"], packed["b2"])

    return out[:B, :n_classes]


# ---------------------------------------------------------------------------
# Pure-JAX reference (same math, standard XLA ops) for correctness checking.
# ---------------------------------------------------------------------------
def _reference_forward(x_nchw, params):
    out = jax.lax.conv_general_dilated(
        x_nchw.astype(jnp.float32), params["conv_w"],
        window_strides=(1, 1), padding=((1, 1), (1, 1)),
        dimension_numbers=("NCHW", "OIHW", "NCHW"))
    out = jax.nn.relu(out + params["conv_b"][None, :, None, None])
    feat = out.mean(axis=(2, 3))                            # (B, Cout)
    h = jax.nn.relu(feat @ params["fc1_w"].T + params["fc1_b"])
    return h @ params["fc2_w"].T + params["fc2_b"]


def init_params(key, c_in=4, c_out=8, hidden=32, n_classes=10):
    k1, k2, k3 = jax.random.split(key, 3)
    return {
        # transfer_model stand-in: Conv2d(c_in -> c_out, 3, pad=1), PyTorch layout.
        "conv_w": 0.1 * jax.random.normal(k1, (c_out, c_in, 3, 3), jnp.float32),
        "conv_b": jnp.zeros((c_out,), jnp.float32),
        # classifier stand-in: Linear layers in PyTorch (out, in) layout.
        "fc1_w": 0.1 * jax.random.normal(k2, (hidden, c_out), jnp.float32),
        "fc1_b": 0.01 * jnp.ones((hidden,), jnp.float32),
        "fc2_w": 0.1 * jax.random.normal(k3, (n_classes, hidden), jnp.float32),
        "fc2_b": jnp.zeros((n_classes,), jnp.float32),
    }


if __name__ == "__main__":
    key = jax.random.PRNGKey(0)
    kx, kp = jax.random.split(key)

    # PyTorch-style NCHW input: batch=2, channels=4, 16x16 spatial.
    x = jax.random.normal(kx, (2, 4, 16, 16), jnp.float32)
    params = init_params(kp)

    # Weight packing (banded conv expansion, pool-into-fc1 fold, transposes,
    # bf16 cast) runs ONCE here, outside the per-call jit.
    packed = pack_params(params, H=16, W=16)

    fwd = jax.jit(functools.partial(full_model_forward, n_classes=10))
    logits = jax.block_until_ready(fwd(x, packed))

    assert logits.shape == (2, 10)
    assert bool(jnp.all(jnp.isfinite(logits)))

    ref = _reference_forward(x, params)
    assert bool(jnp.allclose(logits, ref, rtol=2e-2, atol=2e-3)), "mismatch vs JAX reference"

    # TODO(synk): original module loads `classifier` weights from a .pt checkpoint
    # and a pretrained `transfer_model`; weights here are synthetic. The
    # requires_grad freezing / args.fine_tune logic is training-only and has no
    # forward-pass effect.
    print("KERNEL_OK")
</pallas_src>

<mosaic_0001>
module attributes {stable_mosaic.version = 11 : i64} {
  func.func @_fused_forward_kernel(%arg0: i32, %arg1: memref<3x32x72xbf16, #tpu.memory_space<vmem>>, %arg2: memref<3x72x128xbf16, #tpu.memory_space<vmem>>, %arg3: memref<1x128xf32, #tpu.memory_space<vmem>>, %arg4: memref<128x32xbf16, #tpu.memory_space<vmem>>, %arg5: memref<1x32xf32, #tpu.memory_space<vmem>>, %arg6: memref<32x128xbf16, #tpu.memory_space<vmem>>, %arg7: memref<1x128xf32, #tpu.memory_space<vmem>>, %arg8: memref<2x128xf32, #tpu.memory_space<vmem>>) attributes {dimension_semantics = [#tpu.dimension_semantics<parallel>], iteration_bounds = array<i64: 1>, scalar_prefetch = 0 : i64, scratch_operands = 0 : i64, tpu.core_type = #tpu.core_type<tc>, window_params = [{transform_indices = @transform_0, window_bounds = array<i64: 3, 32, 72>}, {pipeline_mode = #tpu.pipeline_mode<synchronous>, transform_indices = @transform_1, window_bounds = array<i64: 3, 72, 128>}, {pipeline_mode = #tpu.pipeline_mode<synchronous>, transform_indices = @transform_2, window_bounds = array<i64: 1, 128>}, {pipeline_mode = #tpu.pipeline_mode<synchronous>, transform_indices = @transform_3, window_bounds = array<i64: 128, 32>}, {pipeline_mode = #tpu.pipeline_mode<synchronous>, transform_indices = @transform_4, window_bounds = array<i64: 1, 32>}, {pipeline_mode = #tpu.pipeline_mode<synchronous>, transform_indices = @transform_5, window_bounds = array<i64: 32, 128>}, {pipeline_mode = #tpu.pipeline_mode<synchronous>, transform_indices = @transform_6, window_bounds = array<i64: 1, 128>}, {transform_indices = @transform_7, window_bounds = array<i64: 2, 128>}]} {
    %c0 = arith.constant 0 : index
    %c0_0 = arith.constant 0 : index
    %0 = vector.load %arg3[%c0, %c0_0] : memref<1x128xf32, #tpu.memory_space<vmem>>, vector<1x128xf32>
    %1 = vector.shape_cast %0 : vector<1x128xf32> to vector<1x128xf32>
    %2 = vector.broadcast %1 : vector<1x128xf32> to vector<32x128xf32>
    %c0_1 = arith.constant 0 : index
    %c0_2 = arith.constant 0 : index
    %c0_3 = arith.constant 0 : index
    %3 = vector.load %arg1[%c0_1, %c0_2, %c0_3] : memref<3x32x72xbf16, #tpu.memory_space<vmem>>, vector<1x32x72xbf16>
    %4 = vector.shape_cast %3 : vector<1x32x72xbf16> to vector<32x72xbf16>
    %c0_4 = arith.constant 0 : index
    %c0_5 = arith.constant 0 : index
    %c0_6 = arith.constant 0 : index
    %5 = vector.load %arg2[%c0_4, %c0_5, %c0_6] : memref<3x72x128xbf16, #tpu.memory_space<vmem>>, vector<1x72x128xbf16>
    %6 = vector.shape_cast %5 : vector<1x72x128xbf16> to vector<72x128xbf16>
    %cst = arith.constant dense<0.000000e+00> : vector<32x128xf32>
    %7 = tpu.matmul %4, %6, %cst {dimension_numbers = #tpu.dot_dimension_numbers<[1], [0], [0], [1], [0, 0, 1, 1], [], []>} : vector<32x72xbf16>, vector<72x128xbf16>, vector<32x128xf32> -> vector<32x128xf32>
    %8 = arith.addf %2, %7 : vector<32x128xf32>
    %c1 = arith.constant 1 : index
    %c0_7 = arith.constant 0 : index
    %c0_8 = arith.constant 0 : index
    %9 = vector.load %arg1[%c1, %c0_7, %c0_8] : memref<3x32x72xbf16, #tpu.memory_space<vmem>>, vector<1x32x72xbf16>
    %10 = vector.shape_cast %9 : vector<1x32x72xbf16> to vector<32x72xbf16>
    %c1_9 = arith.constant 1 : index
    %c0_10 = arith.constant 0 : index
    %c0_11 = arith.constant 0 : index
    %11 = vector.load %arg2[%c1_9, %c0_10, %c0_11] : memref<3x72x128xbf16, #tpu.memory_space<vmem>>, vector<1x72x128xbf16>
    %12 = vector.shape_cast %11 : vector<1x72x128xbf16> to vector<72x128xbf16>
    %cst_12 = arith.constant dense<0.000000e+00> : vector<32x128xf32>
    %13 = tpu.matmul %10, %12, %cst_12 {dimension_numbers = #tpu.dot_dimension_numbers<[1], [0], [0], [1], [0, 0, 1, 1], [], []>} : vector<32x72xbf16>, vector<72x128xbf16>, vector<32x128xf32> -> vector<32x128xf32>
    %14 = arith.addf %8, %13 : vector<32x128xf32>
    %c2 = arith.constant 2 : index
    %c0_13 = arith.constant 0 : index
    %c0_14 = arith.constant 0 : index
    %15 = vector.load %arg1[%c2, %c0_13, %c0_14] : memref<3x32x72xbf16, #tpu.memory_space<vmem>>, vector<1x32x72xbf16>
    %16 = vector.shape_cast %15 : vector<1x32x72xbf16> to vector<32x72xbf16>
    %c2_15 = arith.constant 2 : index
    %c0_16 = arith.constant 0 : index
    %c0_17 = arith.constant 0 : index
    %17 = vector.load %arg2[%c2_15, %c0_16, %c0_17] : memref<3x72x128xbf16, #tpu.memory_space<vmem>>, vector<1x72x128xbf16>
    %18 = vector.shape_cast %17 : vector<1x72x128xbf16> to vector<72x128xbf16>
    %cst_18 = arith.constant dense<0.000000e+00> : vector<32x128xf32>
    %19 = tpu.matmul %16, %18, %cst_18 {dimension_numbers = #tpu.dot_dimension_numbers<[1], [0], [0], [1], [0, 0, 1, 1], [], []>} : vector<32x72xbf16>, vector<72x128xbf16>, vector<32x128xf32> -> vector<32x128xf32>
    %20 = arith.addf %14, %19 : vector<32x128xf32>
    %cst_19 = arith.constant 0.000000e+00 : f32
    %21 = vector.broadcast %cst_19 : f32 to vector<32x128xf32>
    %22 = arith.maximumf %20, %21 : vector<32x128xf32>
    %23 = vector.extract_strided_slice %22 {offsets = [0, 0], sizes = [16, 128], strides = [1, 1]} : vector<32x128xf32> to vector<16x128xf32>
    %cst_20 = arith.constant dense<0.000000e+00> : vector<128xf32>
    %24 = vector.multi_reduction <add>, %23, %cst_20 [0] : vector<16x128xf32> to vector<128xf32>
    %25 = vector.shape_cast %24 : vector<128xf32> to vector<1x128xf32>
    %26 = vector.extract_strided_slice %22 {offsets = [16, 0], sizes = [16, 128], strides = [1, 1]} : vector<32x128xf32> to vector<16x128xf32>
    %cst_21 = arith.constant dense<0.000000e+00> : vector<128xf32>
    %27 = vector.multi_reduction <add>, %26, %cst_21 [0] : vector<16x128xf32> to vector<128xf32>
    %28 = vector.shape_cast %27 : vector<128xf32> to vector<1x128xf32>
    %29 = tpu.concatenate %25, %28 in 0 : vector<1x128xf32>, vector<1x128xf32> -> vector<2x128xf32>
    %30 = arith.truncf %29 : vector<2x128xf32> to vector<2x128xbf16>
    %c0_22 = arith.constant 0 : index
    %c0_23 = arith.constant 0 : index
    %31 = vector.load %arg4[%c0_22, %c0_23] : memref<128x32xbf16, #tpu.memory_space<vmem>>, vector<128x32xbf16>
    %cst_24 = arith.constant dense<0.000000e+00> : vector<2x32xf32>
    %32 = tpu.matmul %30, %31, %cst_24 {dimension_numbers = #tpu.dot_dimension_numbers<[1], [0], [0], [1], [0, 0, 1, 1], [], []>} : vector<2x128xbf16>, vector<128x32xbf16>, vector<2x32xf32> -> vector<2x32xf32>
    %c0_25 = arith.constant 0 : index
    %c0_26 = arith.constant 0 : index
    %33 = vector.load %arg5[%c0_25, %c0_26] : memref<1x32xf32, #tpu.memory_space<vmem>>, vector<1x32xf32>
    %34 = vector.broadcast %33 : vector<1x32xf32> to vector<2x32xf32>
    %35 = arith.addf %32, %34 : vector<2x32xf32>
    %cst_27 = arith.constant 0.000000e+00 : f32
    %36 = vector.broadcast %cst_27 : f32 to vector<2x32xf32>
    %37 = arith.maximumf %35, %36 : vector<2x32xf32>
    %38 = arith.truncf %37 : vector<2x32xf32> to vector<2x32xbf16>
    %c0_28 = arith.constant 0 : index
    %c0_29 = arith.constant 0 : index
    %39 = vector.load %arg6[%c0_28, %c0_29] : memref<32x128xbf16, #tpu.memory_space<vmem>>, vector<32x128xbf16>
    %cst_30 = arith.constant dense<0.000000e+00> : vector<2x128xf32>
    %40 = tpu.matmul %38, %39, %cst_30 {dimension_numbers = #tpu.dot_dimension_numbers<[1], [0], [0], [1], [0, 0, 1, 1], [], []>} : vector<2x32xbf16>, vector<32x128xbf16>, vector<2x128xf32> -> vector<2x128xf32>
    %c0_31 = arith.constant 0 : index
    %c0_32 = arith.constant 0 : index
    %41 = vector.load %arg7[%c0_31, %c0_32] : memref<1x128xf32, #tpu.memory_space<vmem>>, vector<1x128xf32>
    %42 = vector.broadcast %41 : vector<1x128xf32> to vector<2x128xf32>
    %43 = arith.addf %40, %42 : vector<2x128xf32>
    %c0_33 = arith.constant 0 : index
    %c0_34 = arith.constant 0 : index
    %44 = vector.load %arg8[%c0_33, %c0_34] : memref<2x128xf32, #tpu.memory_space<vmem>>, vector<2x128xf32>
    tpu.vector_store %arg8[%c0_33, %c0_34], %43 {strides = array<i32>} : memref<2x128xf32, #tpu.memory_space<vmem>>, vector<2x128xf32>,
    return
  }
  func.func @transform_0(%arg0: i32) -> (i32, i32, i32) {
    %c0_i32 = arith.constant 0 : i32
    %c0_i32_0 = arith.constant 0 : i32
    %c0_i32_1 = arith.constant 0 : i32
    return %c0_i32, %arg0, %c0_i32_0 : i32, i32, i32
  }
  func.func @transform_1(%arg0: i32) -> (i32, i32, i32) {
    %c0_i32 = arith.constant 0 : i32
    %c0_i32_0 = arith.constant 0 : i32
    %c0_i32_1 = arith.constant 0 : i32
    %c0_i32_2 = arith.constant 0 : i32
    return %c0_i32, %c0_i32_0, %c0_i32_1 : i32, i32, i32
  }
  func.func @transform_2(%arg0: i32) -> (i32, i32) {
    %c0_i32 = arith.constant 0 : i32
    %c0_i32_0 = arith.constant 0 : i32
    %c0_i32_1 = arith.constant 0 : i32
    return %c0_i32, %c0_i32_0 : i32, i32
  }
  func.func @transform_3(%arg0: i32) -> (i32, i32) {
    %c0_i32 = arith.constant 0 : i32
    %c0_i32_0 = arith.constant 0 : i32
    %c0_i32_1 = arith.constant 0 : i32
    return %c0_i32, %c0_i32_0 : i32, i32
  }
  func.func @transform_4(%arg0: i32) -> (i32, i32) {
    %c0_i32 = arith.constant 0 : i32
    %c0_i32_0 = arith.constant 0 : i32
    %c0_i32_1 = arith.constant 0 : i32
    return %c0_i32, %c0_i32_0 : i32, i32
  }
  func.func @transform_5(%arg0: i32) -> (i32, i32) {
    %c0_i32 = arith.constant 0 : i32
    %c0_i32_0 = arith.constant 0 : i32
    %c0_i32_1 = arith.constant 0 : i32
    return %c0_i32, %c0_i32_0 : i32, i32
  }
  func.func @transform_6(%arg0: i32) -> (i32, i32) {
    %c0_i32 = arith.constant 0 : i32
    %c0_i32_0 = arith.constant 0 : i32
    %c0_i32_1 = arith.constant 0 : i32
    return %c0_i32, %c0_i32_0 : i32, i32
  }
  func.func @transform_7(%arg0: i32) -> (i32, i32) {
    %c0_i32 = arith.constant 0 : i32
    %c0_i32_0 = arith.constant 0 : i32
    return %arg0, %c0_i32 : i32, i32
  }
}

</mosaic_0001>

<bundles_post_ra>
// kernel: full_model_forward.1
= control target key start
LH: loop header
LB: loop body
LE: loop exit
PB: predicated region body
PF: predicated region fallthrough
CT: control target
= control target key end

     0   :  { %vm89_vm0 = vcmask 1043456   ;;  %s791_s0 = inlined_call_operand.vmem [shape: bf16[3,32,72], index: 0, kind: input, shape index: {}]   ;;  %s792_s1 = inlined_call_operand.vmem [shape: bf16[3,72,128], index: 1, kind: input, shape index: {}]   ;;  %s793_s2 = inlined_call_operand.vmem [shape: f32[1,128], index: 2, kind: input, shape index: {}]   ;;  %s794_s3 = inlined_call_operand.vmem [shape: bf16[128,32], index: 3, kind: input, shape index: {}]   ;;  %s795_s4 = inlined_call_operand.vmem [shape: f32[1,32], index: 4, kind: input, shape index: {}]   ;;  %s796_s5 = inlined_call_operand.vmem [shape: bf16[32,128], index: 5, kind: input, shape index: {}]   ;;  %s797_s6 = inlined_call_operand.vmem [shape: f32[1,128], index: 6, kind: input, shape index: {}]   ;;  %s798_s7 = inlined_call_operand.hbm [shape: f32[2,128], index: 7, kind: output, shape index: {}]  }
   0x1   :  { %v44_v0 = vld [vmem:[%s792_s1 + $0x20] sm:$0xf]  ;;  %v480_v1 = vld [vmem:[%s792_s1 + $0x44] sm:$0xf]  ;;  %v519_v4 = vld [vmem:[%s792_s1 + $0x68] sm:$0xf] }
   0x2   :  { %v72_v2 = vunpack.c.l.b16 %v44_v0  ;;  %v158_v3 = vunpack.c.l.b16 %v480_v1  ;;  %v242_v5 = vunpack.c.l.b16 %v519_v4  ;;  %v592_v11 = vld [vmem:[%s792_s1 + $0x18] sm:$0xff]  ;;  %v604_v14 = vld [vmem:[%s792_s1 + $0x60] sm:$0xff] }
   0x3   :  { %v598_v13 = vld [vmem:[%s792_s1 + $0x3c] sm:$0xff] }
   0x4   :  { %v77_v6 = vpack.c.b16 %v72_v2, %v72_v2  ;;  %v163_v7 = vpack.c.b16 %v158_v3, %v158_v3  ;;  %v247_v8 = vpack.c.b16 %v242_v5, %v242_v5 }
   0x6   :  { %v91_v9 = vsel %vm89_vm0, %v77_v6, 0  ;;  %v175_v10 = vsel %vm89_vm0, %v163_v7, 0  ;;  %v259_v12 = vsel %vm89_vm0, %v247_v8, 0 }
   0x7   :  { %96 = vmatpush.bf16.msra.mxu0 %v91_v9  ;;  %180 = vmatpush.bf16.msra.mxu1 %v175_v10 }
   0x8   :  { %264 = vmatpush.bf16.msra.mxu2 %v259_v12 }
   0x9   :  { %12 = vsyncpa [#allocation3], 0  ;;  %v591_v15 = vld [vmem:[%s792_s1 + $0x10] sm:$0xff]  ;;  %v603_v17 = vld [vmem:[%s792_s1 + $0x58] sm:$0xff]  ;;  %vm82_vm1 = vcmask 588800   ;;  %vm302_vm2 = vcmask 1040384  }
   0xa   :  { %v597_v16 = vld [vmem:[%s792_s1 + $0x34] sm:$0xff]  ;;  %v590_v18 = vld [vmem:[%s792_s1 + $0x8] sm:$0xff]  ;;  %v589_v21 = vld [vmem:[%s792_s1] sm:$0xff]  ;;  %vm408_vm3 = vcmask 261120   ;;  %s645_s17 = smov [#allocation2]   ;;  %s433_s21 = sshll.u32 %s798_s7, 4  ;;  %s434_s21 = int_to_ptr.hbm [resolvable:$true] %s433_s21 }
   0xb   :  { %97 = vmatpush.bf16.msra.mxu0 %v592_v11  ;;  %181 = vmatpush.bf16.msra.mxu1 %v598_v13  ;;  %v596_v19 = vld [vmem:[%s792_s1 + $0x2c] sm:$0xff]  ;;  %v595_v22 = vld [vmem:[%s792_s1 + $0x24] sm:$0xff]  ;;  %v594_v28 = vld [vmem:[%s791_s0 + $0x18] sm:$0xff]  ;;  %s431_s18 = sshll.u32 %s645_s17, 4  ;;  %s432_s18 = int_to_ptr.vmem [resolvable:$true] %s431_s18 }
   0xc   :  { %265 = vmatpush.bf16.msra.mxu2 %v604_v14  ;;  %v602_v20 = vld [vmem:[%s792_s1 + $0x50] sm:$0xff]  ;;  %v601_v23 = vld [vmem:[%s792_s1 + $0x48] sm:$0xff]  ;;  %v587_v24 = vld [vmem:[%s791_s0] sm:$0xff] }
   0xd   :  { %v593_v25 = vld [vmem:[%s791_s0 + $0x10] sm:$0xff]  ;;  %v599_v26 = vld [vmem:[%s791_s0 + $0x20] sm:$0xff]  ;;  %v588_v27 = vld [vmem:[%s791_s0 + $0x8] sm:$0xff] }
   0xe   :  { %v600_v29 = vld [vmem:[%s791_s0 + $0x28] sm:$0xff]  ;;  %v612_v30 = vld [vmem:[%s794_s3 + $0x38] sm:$0xff]  ;;  %v611_v31 = vld [vmem:[%s794_s3 + $0x30] sm:$0xff] }
   0xf   :  { %98 = vmatpush.bf16.msra.mxu0 %v591_v15  ;;  %182 = vmatpush.bf16.msra.mxu1 %v597_v16  ;;  %v610_v32 = vld [vmem:[%s794_s3 + $0x28] sm:$0xff]  ;;  %v609_v35 = vld [vmem:[%s794_s3 + $0x20] sm:$0xff]  ;;  %v608_v36 = vld [vmem:[%s794_s3 + $0x18] sm:$0xff] }
  0x10   :  { %266 = vmatpush.bf16.msra.mxu2 %v603_v17  ;;  %373 = vmatpush.bf16.msra.mxu3 %v612_v30  ;;  %v616_v37 = vld [vmem:[%s793_s2] ss:$0 sm:$0xff]  ;;  %v607_v40 = vld [vmem:[%s794_s3 + $0x10] sm:$0xff]  ;;  %v606_v44 = vld [vmem:[%s794_s3 + $0x8] sm:$0xff] }
  0x11   :  { %v605_v47 = vld [vmem:[%s794_s3] sm:$0xff]  ;;  %v614_v54 = vld [vmem:[%s796_s5 + $0x8] sm:$0xff] }
  0x12   :  { %v613_v58 = vld [vmem:[%s796_s5] sm:$0xff] }
  0x13   :  { %99 = vmatpush.bf16.msra.mxu0 %v590_v18  ;;  %183 = vmatpush.bf16.msra.mxu1 %v596_v19 }
  0x14   :  { %267 = vmatpush.bf16.msra.mxu2 %v602_v20  ;;  %374 = vmatpush.bf16.msra.mxu3 %v611_v31 }
  0x17   :  { %100 = vmatpush.bf16.msra.mxu0 %v589_v21  ;;  %184 = vmatpush.bf16.msra.mxu1 %v595_v22  ;;  %v617_v21 = vld [vmem:[%s795_s4] ss:$0 sm:$0xff] }
  0x18   :  { %268 = vmatpush.bf16.msra.mxu2 %v601_v23  ;;  %375 = vmatpush.bf16.msra.mxu3 %v610_v32 }
  0x1a   :  { %466 = vmatmul.msk.bf16.vlgmr.msra.gmra.mxu0 %vm82_vm1, %v587_v24  ;;  %505 = vmatmul.msk.bf16.vlgmr.msra.gmra.mxu1 %vm82_vm1, %v593_v25 }
  0x1b   :  { %544 = vmatmul.msk.bf16.vlgmr.msra.gmra.mxu2 %vm82_vm1, %v599_v26 }
  0x1c   :  { %376 = vmatpush.bf16.msra.mxu3 %v609_v35 }
  0x20   :  { %377 = vmatpush.bf16.msra.mxu3 %v608_v36 }
  0x24   :  { %378 = vmatpush.bf16.msra.mxu3 %v607_v40 }
  0x28   :  { %379 = vmatpush.bf16.msra.mxu3 %v606_v44 }
  0x2a   :  { %467 = vmatmul.msk.bf16.gmra.mxu0 %vm82_vm1, %v588_v27  ;;  %506 = vmatmul.msk.bf16.gmra.mxu1 %vm82_vm1, %v594_v28  ;;  %v618_v27 = vld [vmem:[%s797_s6] ss:$0 sm:$0xff] }
  0x2b   :  { %545 = vmatmul.msk.bf16.gmra.mxu2 %vm82_vm1, %v600_v29 }
  0x2c   :  { %380 = vmatpush.bf16.msra.mxu3 %v605_v47 }
  0x30   :  { %418 = vmatpush.bf16.msrb.mxu3 %v614_v54 }
  0x34   :  { %419 = vmatpush.bf16.msrb.mxu3 %v613_v58 }
  0x97   :  { %v102_v33 = vpop.f32.mrf.mxu0  ;;  %v186_v34 = vpop.f32.mrf.mxu1 }
  0x98   :  { %v112_v42 = vadd.f32 %v616_v37, %v102_v33 }
  0x9a   :  { %v196_v45 = vadd.f32 %v186_v34, %v112_v42 }
  0x9e   :  { %v270_v38 = vpop.f32.mrf.mxu2 }
  0x9f   :  { %v104_v39 = vpop.f32.mrf.mxu0  ;;  %v188_v41 = vpop.f32.mrf.mxu1  ;;  %v280_v51 = vadd.f32 %v270_v38, %v196_v45 }
  0xa0   :  { %v113_v43 = vadd.f32 %v616_v37, %v104_v39 }
  0xa1   :  { %v284_v55 = vmax.f32 %v280_v51, 0.0 }
  0xa2   :  { %v197_v46 = vadd.f32 %v188_v41, %v113_v43 }
  0xa6   :  { %v272_v48 = vpop.f32.mrf.mxu2 }
  0xa7   :  { %v281_v49 = vadd.f32 %v272_v48, %v197_v46  ;;  %v107_v50 = vpop.f32.mrf.mxu0  ;;  %v191_v52 = vpop.f32.mrf.mxu1 }
  0xa8   :  { %v114_v56 = vadd.f32 %v616_v37, %v107_v50 }
  0xa9   :  { %v285_v53 = vmax.f32 %v281_v49, 0.0 }
  0xaa   :  { %v198_v61 = vadd.f32 %v191_v52, %v114_v56 }
  0xab   :  { %v288_v59 = vadd.f32 %v285_v53, %v284_v55 }
  0xad   :  { %v289_v63 = vrot.slane %v288_v59, 4 }
  0xae   :  { %v275_v57 = vpop.f32.mrf.mxu2 }
  0xaf   :  { %v109_v60 = vpop.f32.mrf.mxu0  ;;  %v193_v0 = vpop.f32.mrf.mxu1  ;;  %v282_v1 = vadd.f32 %v275_v57, %v198_v61  ;;  %v290_v4 = vadd.f32 %v289_v63, %v288_v59 }
  0xb0   :  { %v115_v62 = vadd.f32 %v616_v37, %v109_v60 }
  0xb1   :  { %v286_v6 = vmax.f32 %v282_v1, 0.0  ;;  %v291_v8 = vrot.slane %v290_v4, 2 }
  0xb2   :  { %v199_v2 = vadd.f32 %v193_v0, %v115_v62 }
  0xb3   :  { %v292_v11 = vadd.f32 %v291_v8, %v290_v4 }
  0xb5   :  { %v293_v15 = vrot.slane %v292_v11, 1 }
  0xb6   :  { %v277_v3 = vpop.f32.mrf.mxu2 }
  0xb7   :  { %v283_v5 = vadd.f32 %v277_v3, %v199_v2  ;;  %v294_v17 = vadd.f32 %v293_v15, %v292_v11 }
  0xb9   :  { %v287_v7 = vmax.f32 %v283_v5, 0.0 }
  0xbb   :  { %v295_v9 = vadd.f32 %v287_v7, %v286_v6 }
  0xbd   :  { %v296_v10 = vrot.slane %v295_v9, 4 }
  0xbf   :  { %v297_v12 = vadd.f32 %v296_v10, %v295_v9 }
  0xc1   :  { %v298_v13 = vrot.slane %v297_v12, 2 }
  0xc3   :  { %v299_v14 = vadd.f32 %v298_v13, %v297_v12 }
  0xc5   :  { %v300_v16 = vrot.slane %v299_v14, 1 }
  0xc7   :  { %v301_v18 = vadd.f32 %v300_v16, %v299_v14 }
  0xc9   :  { %v303_v19 = vsel %vm302_vm2, %v294_v17, %v301_v18 }
  0xca   :  { %v304_v20 = vpack.c.bf16 %v303_v19, %v303_v19 }
  0xcc   :  { %381 = vmatmul.bf16.vlgmr.msra.gmra.mxu3 %v304_v20 }
 0x14f   :  { %v382_v22 = vpop.f32.mrf.mxu3 }
 0x150   :  { %v383_v23 = vadd.f32 %v617_v21, %v382_v22 }
 0x152   :  { %v386_v24 = vmax.f32 %v383_v23, 0.0 }
 0x154   :  { %v387_v25 = vpack.c.bf16 %v386_v24, %v386_v24 }
 0x156   :  { %586 = vmatmul.msk.bf16.vlgmr.msrb.gmra.mxu3 %vm408_vm3, %v387_v25 }
 0x157   :  { %v384_v26 = vpop.f32.mrf.mxu3 }
 0x1d9   :  { %v421_v28 = vpop.f32.mrf.mxu3 }
 0x1da   :  { %v422_v29 = vadd.f32 %v618_v27, %v421_v28 }
 0x1dc   :  { %425 = vst [vmem:[#allocation2] sm:$0x3] %v422_v29 }
 0x1dd   :  { %436 = dma.vmem_to_hbm [thread:$0]  %s432_s18, 32, %s434_s21, [#allocation3]  }
 0x1e1   :  { %v423_v30 = vpop.f32.mrf.mxu3 }
 0x1e2   :  { %643 = dma.done.wait [#allocation3], 32  }
 0x1e3   :  { %644 = vsyncadd [#allocation3], 4294967264 }
 0x1e4   :  { %441 = vsyncpa [#allocation3], 1 }

</bundles_post_ra>
